<compile_context>
chip_gen: v7x
topology: tpu7x:2x2x1
jax: 0.10.0
libtpu: 0.0.40
codegen_flags: <defaults>
</compile_context>

<pallas_src>
import jax
import jax.numpy as jnp
from jax.experimental import pallas as pl
from jax.experimental.pallas import tpu as pltpu

DATA_CH = 32          # hardcoded `x[..., :32]` split in the PyTorch forward
OUT_CHANNEL = 26      # hardcoded `[..., 26]` channel select in the PyTorch forward
MAX_BATCH_TILE = 4096  # rows per grid step; (4096, 576) f32 block = ~9.4 MB / buffer


def _dlinear_kernel(x_ref, w_ref, b_ref, o_ref):
    # x_ref: (tb, L*Ctot)  flattened (window, channel) activations, contiguous DMA
    # w_ref: (L*Ctot, F)   folded weight (decomp + Trend/Seasonal linears + ch-26 select)
    # b_ref: (1, F)        folded bias
    # o_ref: (tb, F)       output tile (batch on sublanes, F on lanes)
    o_ref[...] = (
        jnp.dot(x_ref[...], w_ref[...], preferred_element_type=jnp.float32)
        + b_ref[...]
    ).astype(o_ref.dtype)


def _averaging_matrix(window_size, kernel_size):
    """[L, L] matrix A such that A @ x == replicate-padded moving average of x."""
    pad = (kernel_size - 1) // 2
    cols = jnp.clip(
        jnp.arange(window_size)[:, None] + jnp.arange(kernel_size)[None, :] - pad,
        0, window_size - 1)                                            # [L, k]
    return jax.nn.one_hot(cols, window_size, dtype=jnp.float32).sum(axis=1) / kernel_size


def ltsf_dlinear_init(w_trend_t, w_seasonal_t, b_trend, b_seasonal,
                      kernel_size, feature_size):
    """One-time fold of series_decomp + both Linears + the channel-26 select.

    Weights are passed pre-transposed [L, F]; biases [1, F].
    Returns:
      w_big: [L*Ctot, F]  zero-padded so that (x.reshape(B, L*Ctot) @ w_big)
             equals the channel-26 output of the full module (minus bias).
      b_eff: [1, F]
    Compute this ONCE at model init; the per-call forward is a single kernel.
    """
    L, F = w_trend_t.shape
    if kernel_size % 2 != 1:
        raise ValueError("replicate padding of (k-1)//2 requires an odd kernel_size "
                         "to match AvgPool1d(stride=1) output length")
    if not (OUT_CHANNEL < DATA_CH <= feature_size):
        raise ValueError("selected output channel must be a data channel (< 32)")

    # trend = A @ x_col ; seasonal = (I - A) @ x_col  (per batch, channel 26)
    # Linear_Trend(trend) + Linear_Seasonal(seasonal)
    #   = x_col^T ( A^T W_T + (I - A)^T W_S ) + (b_T + b_S)
    A = _averaging_matrix(L, kernel_size)                               # [L, L]
    w_eff = (A.T @ w_trend_t
             + (jnp.eye(L, dtype=jnp.float32) - A).T @ w_seasonal_t)    # [L, F]

    # Scatter w_eff into the rows of the flattened (l, c) axis at c == OUT_CHANNEL;
    # every other channel's rows are zero, so the channel select is folded into
    # the matmul itself (extra MXU work is fully hidden under the input DMA).
    rows = jnp.arange(L) * feature_size + OUT_CHANNEL
    w_big = jnp.zeros((L * feature_size, F), jnp.float32).at[rows].set(
        w_eff.astype(jnp.float32))
    b_eff = (b_trend + b_seasonal).reshape(1, F).astype(jnp.float32)
    return w_big, b_eff


@jax.jit
def ltsf_dlinear_forward(x, w_big, b_eff):
    """x: [B, L, Ctot] f32. Returns [B, F] == LTSF_DLinear(individual=False)(x)."""
    B, L, Ctot = x.shape
    KW, F = w_big.shape
    if KW != L * Ctot:
        raise ValueError("w_big does not match x's (window, channel) extent")

    # Free metadata reshape: element (l, c) -> row index l*Ctot + c, matching w_big.
    x2 = x.reshape(B, KW).astype(jnp.float32)

    if B <= MAX_BATCH_TILE:
        tb = B                                   # single full block
    else:
        n_tiles = pl.cdiv(B, MAX_BATCH_TILE)
        n_tiles += n_tiles % 2                   # even step count: balanced on v7x's 2 TCs
        tb = ((pl.cdiv(B, n_tiles) + 7) // 8) * 8  # sublane-aligned (multiple of 8)
    grid = (pl.cdiv(B, tb),)

    return pl.pallas_call(
        _dlinear_kernel,
        out_shape=jax.ShapeDtypeStruct((B, F), x.dtype),
        grid=grid,
        in_specs=[
            pl.BlockSpec((tb, KW), lambda i: (i, 0)),   # activation tile, contiguous DMA
            pl.BlockSpec((KW, F), lambda i: (0, 0)),    # resident folded weight
            pl.BlockSpec((1, F), lambda i: (0, 0)),     # resident folded bias
        ],
        out_specs=pl.BlockSpec((tb, F), lambda i: (i, 0)),
        compiler_params=pltpu.CompilerParams(
            dimension_semantics=("parallel",),
            vmem_limit_bytes=32 * 1024 * 1024,          # safe on v5e default / v7x physical
        ),
    )(x2, w_big, b_eff)


def _reference(x, w_trend_t, w_seasonal_t, b_trend, b_seasonal, kernel_size):
    """Pure-JAX reference mirroring the full PyTorch forward, for correctness."""
    L = x.shape[1]
    x_data = x[..., :DATA_CH]
    x_onehot = x[..., DATA_CH:]
    pad = (kernel_size - 1) // 2
    front = jnp.repeat(x_data[:, 0:1, :], pad, axis=1)
    end = jnp.repeat(x_data[:, -1:, :], pad, axis=1)
    padded = jnp.concatenate([front, x_data, end], axis=1)
    mm = jnp.mean(jnp.stack([padded[:, j:j + L, :] for j in range(kernel_size)], 0), 0)
    trend = jnp.concatenate([mm, x_onehot], axis=2)                 # decomp(1): trend = x
    seasonal = jnp.concatenate([x_data - mm, jnp.zeros_like(x_onehot)], axis=2)
    trend_out = jnp.einsum("blc,lf->bcf", trend, w_trend_t) + b_trend
    seasonal_out = jnp.einsum("blc,lf->bcf", seasonal, w_seasonal_t) + b_seasonal
    return (trend_out + seasonal_out)[:, OUT_CHANNEL, :]


if __name__ == "__main__":
    # Module hyperparameters (individual=False branch).
    window_size = 16      # L
    forcast_size = 8      # F
    kernel_size = 5       # odd -> moving-average output length == window_size
    onehot_size = 4
    feature_size = DATA_CH + onehot_size   # Ctot = 36 (channel 26 is a data channel)
    batch = 2

    key = jax.random.PRNGKey(0)
    kx, kwt, kws, kbt, kbs, kx2 = jax.random.split(key, 6)

    x = jax.random.normal(kx, (batch, window_size, feature_size), dtype=jnp.float32)

    # Parameters as after training: initialized to (1/window_size)*ones (as in
    # __init__) plus a small perturbation so Trend/Seasonal weights differ
    # (exercises the decomposition fold).  Stored transposed [L, F].
    w_trend_t = (1.0 / window_size
                 + 0.05 * jax.random.normal(kwt, (window_size, forcast_size))).astype(jnp.float32)
    w_seasonal_t = (1.0 / window_size
                    + 0.05 * jax.random.normal(kws, (window_size, forcast_size))).astype(jnp.float32)
    bound = 1.0 / (window_size ** 0.5)
    b_trend = jax.random.uniform(kbt, (1, forcast_size), jnp.float32, -bound, bound)
    b_seasonal = jax.random.uniform(kbs, (1, forcast_size), jnp.float32, -bound, bound)
    # TODO(synk): self.fc_onehot is defined in __init__ but never used in forward -> omitted.

    # One-time parameter fold (hoisted out of the per-call path per review).
    w_big, b_eff = ltsf_dlinear_init(w_trend_t, w_seasonal_t, b_trend, b_seasonal,
                                     kernel_size, feature_size)
    w_big, b_eff = jax.block_until_ready((w_big, b_eff))

    # Small-batch check.
    out = jax.block_until_ready(ltsf_dlinear_forward(x, w_big, b_eff))
    ref = _reference(x, w_trend_t, w_seasonal_t, b_trend, b_seasonal, kernel_size)
    if not bool(jnp.allclose(out, ref, atol=1e-5, rtol=1e-5)):
        raise AssertionError("Pallas kernel output mismatch vs JAX reference (small batch)")

    # Larger batch: exercises the batch-tiled grid (2 even steps) and a partial
    # last block masked by Pallas on the output store.
    big_batch = 5000
    x_big = jax.random.normal(kx2, (big_batch, window_size, feature_size), dtype=jnp.float32)
    out_big = jax.block_until_ready(ltsf_dlinear_forward(x_big, w_big, b_eff))
    ref_big = _reference(x_big, w_trend_t, w_seasonal_t, b_trend, b_seasonal, kernel_size)
    if not bool(jnp.allclose(out_big, ref_big, atol=1e-5, rtol=1e-5)):
        raise AssertionError("Pallas kernel output mismatch vs JAX reference (tiled batch)")

    print("KERNEL_OK")
</pallas_src>

<mosaic_0001>
module attributes {stable_mosaic.version = 11 : i64} {
  func.func @_dlinear_kernel(%arg0: i32, %arg1: memref<2x576xf32, #tpu.memory_space<vmem>>, %arg2: memref<576x8xf32, #tpu.memory_space<vmem>>, %arg3: memref<1x8xf32, #tpu.memory_space<vmem>>, %arg4: memref<2x8xf32, #tpu.memory_space<vmem>>) attributes {dimension_semantics = [#tpu.dimension_semantics<parallel>], iteration_bounds = array<i64: 1>, scalar_prefetch = 0 : i64, scratch_operands = 0 : i64, tpu.core_type = #tpu.core_type<tc>, window_params = [{transform_indices = @transform_0, window_bounds = array<i64: 2, 576>}, {pipeline_mode = #tpu.pipeline_mode<synchronous>, transform_indices = @transform_1, window_bounds = array<i64: 576, 8>}, {pipeline_mode = #tpu.pipeline_mode<synchronous>, transform_indices = @transform_2, window_bounds = array<i64: 1, 8>}, {transform_indices = @transform_3, window_bounds = array<i64: 2, 8>}]} {
    %c0 = arith.constant 0 : index
    %c0_0 = arith.constant 0 : index
    %0 = vector.load %arg1[%c0, %c0_0] : memref<2x576xf32, #tpu.memory_space<vmem>>, vector<2x576xf32>
    %c0_1 = arith.constant 0 : index
    %c0_2 = arith.constant 0 : index
    %1 = vector.load %arg2[%c0_1, %c0_2] : memref<576x8xf32, #tpu.memory_space<vmem>>, vector<576x8xf32>
    %cst = arith.constant dense<0.000000e+00> : vector<2x8xf32>
    %2 = tpu.matmul %0, %1, %cst {dimension_numbers = #tpu.dot_dimension_numbers<[1], [0], [0], [1], [0, 0, 1, 1], [], []>} : vector<2x576xf32>, vector<576x8xf32>, vector<2x8xf32> -> vector<2x8xf32>
    %c0_3 = arith.constant 0 : index
    %c0_4 = arith.constant 0 : index
    %3 = vector.load %arg3[%c0_3, %c0_4] : memref<1x8xf32, #tpu.memory_space<vmem>>, vector<1x8xf32>
    %4 = vector.broadcast %3 : vector<1x8xf32> to vector<2x8xf32>
    %5 = arith.addf %2, %4 : vector<2x8xf32>
    %c0_5 = arith.constant 0 : index
    %c0_6 = arith.constant 0 : index
    %6 = vector.load %arg4[%c0_5, %c0_6] : memref<2x8xf32, #tpu.memory_space<vmem>>, vector<2x8xf32>
    tpu.vector_store %arg4[%c0_5, %c0_6], %5 {strides = array<i32>} : memref<2x8xf32, #tpu.memory_space<vmem>>, vector<2x8xf32>,
    return
  }
  func.func @transform_0(%arg0: i32) -> (i32, i32) {
    %c0_i32 = arith.constant 0 : i32
    %c0_i32_0 = arith.constant 0 : i32
    return %arg0, %c0_i32 : i32, i32
  }
  func.func @transform_1(%arg0: i32) -> (i32, i32) {
    %c0_i32 = arith.constant 0 : i32
    %c0_i32_0 = arith.constant 0 : i32
    %c0_i32_1 = arith.constant 0 : i32
    return %c0_i32, %c0_i32_0 : i32, i32
  }
  func.func @transform_2(%arg0: i32) -> (i32, i32) {
    %c0_i32 = arith.constant 0 : i32
    %c0_i32_0 = arith.constant 0 : i32
    %c0_i32_1 = arith.constant 0 : i32
    return %c0_i32, %c0_i32_0 : i32, i32
  }
  func.func @transform_3(%arg0: i32) -> (i32, i32) {
    %c0_i32 = arith.constant 0 : i32
    %c0_i32_0 = arith.constant 0 : i32
    return %arg0, %c0_i32 : i32, i32
  }
}

</mosaic_0001>

<bundles_post_ra>
// kernel: ltsf_dlinear_forward.1
= control target key start
LH: loop header
LB: loop body
LE: loop exit
PB: predicated region body
PF: predicated region fallthrough
CT: control target
= control target key end

     0   :  { %v562_v43 = vmov 1983009808   ;;  %v102_v45 = vlaneseq  ;;  %s824_s0 = inlined_call_operand.vmem [shape: f32[2,576], index: 0, kind: input, shape index: {}]   ;;  %s825_s1 = inlined_call_operand.vmem [shape: f32[576,8], index: 1, kind: input, shape index: {}]   ;;  %s826_s2 = inlined_call_operand.vmem [shape: f32[1,8], index: 2, kind: input, shape index: {}]   ;;  %s827_s3 = inlined_call_operand.hbm [shape: f32[2,8], index: 3, kind: output, shape index: {}]  }
   0x1   :  { %v33_v0 = vld [vmem:[%s825_s1 + $0x80] sm:$0xff]  ;;  %v34_v1 = vld [vmem:[%s825_s1 + $0x88] sm:$0xff]  ;;  %v35_v11 = vld [vmem:[%s825_s1 + $0x90] sm:$0xff]  ;;  %v100_v44 = vunpack.c.l.s4 %v562_v43 }
   0x2   :  { %v17_v2 = vld [vmem:[%s825_s1] sm:$0xff]  ;;  %v456_v3 = vpack.c.bf16 %v34_v1, %v33_v0  ;;  %v18_v4 = vld [vmem:[%s825_s1 + $0x8] sm:$0xff]  ;;  %v36_v13 = vld [vmem:[%s825_s1 + $0x98] sm:$0xff]  ;;  %v103_v60 = vshrl.u32 %v102_v45, 7 }
   0x3   :  { %v65_v5 = vld [vmem:[%s825_s1 + $0x180] sm:$0xff]  ;;  %v66_v6 = vld [vmem:[%s825_s1 + $0x188] sm:$0xff]  ;;  %v458_v7 = vpack.c.bf16 %v18_v4, %v17_v2  ;;  %v19_v14 = vld [vmem:[%s825_s1 + $0x10] sm:$0xff]  ;;  %v460_v16 = vpack.c.bf16 %v36_v13, %v35_v11  ;;  %v101_v59 = vunpack.c.0.s8 %v100_v44 }
   0x4   :  { %v488_v8 = vpack.c.bf16 %v66_v6, %v65_v5  ;;  %v49_v9 = vld [vmem:[%s825_s1 + $0x100] sm:$0xff]  ;;  %v50_v10 = vld [vmem:[%s825_s1 + $0x108] sm:$0xff]  ;;  %457 = vmatprep.subr.bf16.mxu0 %v456_v3  ;;  %v20_v15 = vld [vmem:[%s825_s1 + $0x18] sm:$0xff] }
   0x5   :  { %v490_v12 = vpack.c.bf16 %v50_v10, %v49_v9  ;;  %459 = vmatpush3.bf16.msra.mxu0 %v458_v7  ;;  %v462_v17 = vpack.c.bf16 %v20_v15, %v19_v14  ;;  %v67_v18 = vld [vmem:[%s825_s1 + $0x190] sm:$0xff]  ;;  %v68_v19 = vld [vmem:[%s825_s1 + $0x198] sm:$0xff]  ;;  %v37_v23 = vld [vmem:[%s825_s1 + $0xa0] sm:$0xff]  ;;  %v104_v10 = vsub.s32 %v101_v59, %v103_v60 }
   0x6   :  { %489 = vmatprep.subr.bf16.mxu1 %v488_v8  ;;  %v51_v20 = vld [vmem:[%s825_s1 + $0x110] sm:$0xff]  ;;  %v492_v21 = vpack.c.bf16 %v68_v19, %v67_v18  ;;  %v52_v22 = vld [vmem:[%s825_s1 + $0x118] sm:$0xff]  ;;  %v38_v24 = vld [vmem:[%s825_s1 + $0xa8] sm:$0xff]  ;;  %461 = vmatprep.subr.bf16.mxu0 %v460_v16 }
   0x7   :  { %491 = vmatpush3.bf16.msra.mxu1 %v490_v12  ;;  %v494_v25 = vpack.c.bf16 %v52_v22, %v51_v20  ;;  %v464_v26 = vpack.c.bf16 %v38_v24, %v37_v23  ;;  %v21_v27 = vld [vmem:[%s825_s1 + $0x20] sm:$0xff]  ;;  %v22_v28 = vld [vmem:[%s825_s1 + $0x28] sm:$0xff]  ;;  %v39_v35 = vld [vmem:[%s825_s1 + $0xb0] sm:$0xff] }
   0x8   :  { %v69_v29 = vld [vmem:[%s825_s1 + $0x1a0] sm:$0xff]  ;;  %493 = vmatprep.subr.bf16.mxu1 %v492_v21  ;;  %v70_v30 = vld [vmem:[%s825_s1 + $0x1a8] sm:$0xff]  ;;  %v466_v33 = vpack.c.bf16 %v22_v28, %v21_v27  ;;  %v40_v36 = vld [vmem:[%s825_s1 + $0xb8] sm:$0xff] }
   0x9   :  { %v53_v31 = vld [vmem:[%s825_s1 + $0x120] sm:$0xff]  ;;  %v54_v32 = vld [vmem:[%s825_s1 + $0x128] sm:$0xff]  ;;  %463 = vmatpush3.bf16.msra.mxu0 %v462_v17  ;;  %v496_v34 = vpack.c.bf16 %v70_v30, %v69_v29  ;;  %v23_v37 = vld [vmem:[%s825_s1 + $0x30] sm:$0xff]  ;;  %v468_v39 = vpack.c.bf16 %v40_v36, %v39_v35 }
   0xa   :  { %465 = vmatprep.subr.bf16.mxu0 %v464_v26  ;;  %v498_v38 = vpack.c.bf16 %v54_v32, %v53_v31  ;;  %v24_v40 = vld [vmem:[%s825_s1 + $0x38] sm:$0xff]  ;;  %v71_v41 = vld [vmem:[%s825_s1 + $0x1b0] sm:$0xff]  ;;  %v41_v49 = vld [vmem:[%s825_s1 + $0xc0] sm:$0xff] }
   0xb   :  { %495 = vmatpush3.bf16.msra.mxu1 %v494_v25  ;;  %v72_v42 = vld [vmem:[%s825_s1 + $0x1b8] sm:$0xff]  ;;  %v55_v47 = vld [vmem:[%s825_s1 + $0x130] sm:$0xff]  ;;  %v42_v50 = vld [vmem:[%s825_s1 + $0xc8] sm:$0xff]  ;;  %v470_v51 = vpack.c.bf16 %v24_v40, %v23_v37 }
   0xc   :  { %497 = vmatprep.subr.bf16.mxu1 %v496_v34  ;;  %v500_v46 = vpack.c.bf16 %v72_v42, %v71_v41  ;;  %v56_v48 = vld [vmem:[%s825_s1 + $0x138] sm:$0xff]  ;;  %v73_v52 = vld [vmem:[%s825_s1 + $0x1c0] sm:$0xff]  ;;  %v74_v53 = vld [vmem:[%s825_s1 + $0x1c8] sm:$0xff]  ;;  %v472_v55 = vpack.c.bf16 %v42_v50, %v41_v49 }
   0xd   :  { %467 = vmatpush3.bf16.msra.mxu0 %v466_v33  ;;  %v502_v54 = vpack.c.bf16 %v56_v48, %v55_v47  ;;  %v25_v56 = vld [vmem:[%s825_s1 + $0x40] sm:$0xff]  ;;  %v26_v57 = vld [vmem:[%s825_s1 + $0x48] sm:$0xff]  ;;  %v504_v61 = vpack.c.bf16 %v74_v53, %v73_v52  ;;  %v43_v63 = vld [vmem:[%s825_s1 + $0xd0] sm:$0xff] }
   0xe   :  { %469 = vmatprep.subr.bf16.mxu0 %v468_v39  ;;  %v57_v58 = vld [vmem:[%s825_s1 + $0x140] sm:$0xff]  ;;  %v58_v62 = vld [vmem:[%s825_s1 + $0x148] sm:$0xff]  ;;  %v44_v0 = vld [vmem:[%s825_s1 + $0xd8] sm:$0xff]  ;;  %v474_v3 = vpack.c.bf16 %v26_v57, %v25_v56 }
   0xf   :  { %499 = vmatpush3.bf16.msra.mxu1 %v498_v38  ;;  %v75_v1 = vld [vmem:[%s825_s1 + $0x1d0] sm:$0xff]  ;;  %v76_v2 = vld [vmem:[%s825_s1 + $0x1d8] sm:$0xff]  ;;  %v506_v5 = vpack.c.bf16 %v58_v62, %v57_v58  ;;  %v476_v6 = vpack.c.bf16 %v44_v0, %v43_v63  ;;  %v45_v12 = vld [vmem:[%s825_s1 + $0xe0] sm:$0xff] }
  0x10   :  { %501 = vmatprep.subr.bf16.mxu1 %v500_v46  ;;  %v27_v4 = vld [vmem:[%s825_s1 + $0x50] sm:$0xff]  ;;  %v28_v7 = vld [vmem:[%s825_s1 + $0x58] sm:$0xff]  ;;  %v508_v11 = vpack.c.bf16 %v76_v2, %v75_v1  ;;  %v46_v13 = vld [vmem:[%s825_s1 + $0xe8] sm:$0xff] }
  0x11   :  { %471 = vmatpush3.bf16.msra.mxu0 %v470_v51  ;;  %v59_v8 = vld [vmem:[%s825_s1 + $0x150] sm:$0xff]  ;;  %v60_v9 = vld [vmem:[%s825_s1 + $0x158] sm:$0xff]  ;;  %v77_v14 = vld [vmem:[%s825_s1 + $0x1e0] sm:$0xff]  ;;  %v478_v16 = vpack.c.bf16 %v28_v7, %v27_v4  ;;  %v480_v19 = vpack.c.bf16 %v46_v13, %v45_v12 }
  0x12   :  { %473 = vmatprep.subr.bf16.mxu0 %v472_v55  ;;  %v78_v15 = vld [vmem:[%s825_s1 + $0x1e8] sm:$0xff]  ;;  %v510_v17 = vpack.c.bf16 %v60_v9, %v59_v8  ;;  %v15_v18 = vld [vmem:[%s824_s0] sm:$0xff]  ;;  %v47_v27 = vld [vmem:[%s825_s1 + $0xf0] sm:$0xff] }
  0x13   :  { %503 = vmatpush3.bf16.msra.mxu1 %v502_v54  ;;  %v29_v20 = vld [vmem:[%s825_s1 + $0x60] sm:$0xff]  ;;  %v30_v21 = vld [vmem:[%s825_s1 + $0x68] sm:$0xff]  ;;  %v105_v23 = vrot.slane %v15_v18, %v104_v10  ;;  %v98_v24 = vcombine.high %v15_v18, %v15_v18  ;;  %v512_v25 = vpack.c.bf16 %v78_v15, %v77_v14  ;;  %v48_v28 = vld [vmem:[%s825_s1 + $0xf8] sm:$0xff] }
  0x14   :  { %505 = vmatprep.subr.bf16.mxu1 %v504_v61  ;;  %v61_v22 = vld [vmem:[%s825_s1 + $0x160] sm:$0xff]  ;;  %v62_v26 = vld [vmem:[%s825_s1 + $0x168] sm:$0xff]  ;;  %v79_v29 = vld [vmem:[%s825_s1 + $0x1f0] sm:$0xff]  ;;  %v482_v33 = vpack.c.bf16 %v30_v21, %v29_v20  ;;  %v484_v35 = vpack.c.bf16 %v48_v28, %v47_v27 }
  0x15   :  { %475 = vmatpush3.bf16.msra.mxu0 %v474_v3  ;;  %v80_v30 = vld [vmem:[%s825_s1 + $0x1f8] sm:$0xff]  ;;  %v113_v31 = vcombine.high %v105_v23, %v105_v23  ;;  %v112_v32 = vrot.slane %v98_v24, %v104_v10  ;;  %v514_v34 = vpack.c.bf16 %v62_v26, %v61_v22  ;;  %v31_v36 = vld [vmem:[%s825_s1 + $0x70] sm:$0xff] }
  0x16   :  { %477 = vmatprep.subr.bf16.mxu0 %v476_v6  ;;  %v32_v37 = vld [vmem:[%s825_s1 + $0x78] sm:$0xff] }
  0x17   :  { %507 = vmatpush3.bf16.msra.mxu1 %v506_v5  ;;  %v114_v38 = vcombine.high %v112_v32, %v112_v32 }
  0x18   :  { %509 = vmatprep.subr.bf16.mxu1 %v508_v11 }
  0x19   :  { %479 = vmatpush3.bf16.msra.mxu0 %v478_v16 }
  0x1a   :  { %481 = vmatprep.subr.bf16.mxu0 %v480_v19 }
  0x1b   :  { %511 = vmatpush3.bf16.msra.mxu1 %v510_v17 }
  0x1c   :  { %8 = vsyncpa [#allocation3], 0  ;;  %513 = vmatprep.subr.bf16.mxu1 %v512_v25  ;;  %v516_v39 = vpack.c.bf16 %v80_v30, %v79_v29  ;;  %193 = vmatprep.mubr.f32.mxu0 %v113_v31  ;;  %v63_v40 = vld [vmem:[%s825_s1 + $0x170] sm:$0xff]  ;;  %v64_v41 = vld [vmem:[%s825_s1 + $0x178] sm:$0xff]  ;;  %v486_v42 = vpack.c.bf16 %v32_v37, %v31_v36  ;;  %v563_v47 = vmov 0.0|0.0   ;;  %vm564_vm0 = vmmov 0  }
  0x1d   :  { %263 = vmatprep.mubr.f32.mxu1 %v114_v38  ;;  %483 = vmatpush3.bf16.msra.mxu0 %v482_v33  ;;  %v518_v43 = vpack.c.bf16 %v64_v41, %v63_v40  ;;  %v81_v44 = vld [vmem:[%s825_s1 + $0x200] sm:$0xff]  ;;  %v82_v45 = vld [vmem:[%s825_s1 + $0x208] sm:$0xff]  ;;  %v83_v48 = vld [vmem:[%s825_s1 + $0x210] sm:$0xff]  ;;  %v565_v53 = vmov 0.0   ;;  %vm126_vm1 = vcmask 523264   ;;  %vm339_vm2 = vcmask 58368  }
  0x1e   :  { %485 = vmatprep.subr.bf16.mxu0 %v484_v35  ;;  %v521_v46 = vpack.c.bf16 %v82_v45, %v81_v44  ;;  %v84_v49 = vld [vmem:[%s825_s1 + $0x218] sm:$0xff]  ;;  %v85_v51 = vld [vmem:[%s825_s1 + $0x220] sm:$0xff]  ;;  %v86_v52 = vld [vmem:[%s825_s1 + $0x228] sm:$0xff] }
  0x1f   :  { %515 = vmatpush3.bf16.msra.mxu1 %v514_v34  ;;  %v524_v50 = vpack.c.bf16 %v84_v49, %v83_v48  ;;  %v527_v54 = vpack.c.bf16 %v86_v52, %v85_v51  ;;  %v87_v55 = vld [vmem:[%s825_s1 + $0x230] sm:$0xff]  ;;  %v88_v56 = vld [vmem:[%s825_s1 + $0x238] sm:$0xff]  ;;  %v356_v58 = vld.sshfl [vmem:[%s824_s0 + $0x8] sm:$0x3 pattern:$0x76325410] }
  0x20   :  { %517 = vmatprep.subr.bf16.mxu1 %v516_v39  ;;  %v530_v57 = vpack.c.bf16 %v88_v56, %v87_v55  ;;  %v355_v60 = vld [vmem:[%s826_s2] ss:$0 sm:$0xff]  ;;  %s566_s1 = smov [#allocation2]  }
  0x21   :  { %487 = vmatpush3.bf16.msra.mxu0 %v486_v42  ;;  %s347_s27 = sshll.u32 %s566_s1, 4  ;;  %s348_s27 = int_to_ptr.vmem [resolvable:$true] %s347_s27 }
  0x22   :  { %520 = vmatprep.subr.bf16.mxu0 %v563_v47  ;;  %s538_s0 = scalar_lea.vmem %s348_s27, 32  ;;  %p543_p1 = scmp.lt.s32.totalorder %s348_s27, %s348_s27 }
  0x23   :  { %519 = vmatpush3.bf16.msra.mxu1 %v518_v43  ;;  %p539_p0 = scmp.ne.s32.totalorder %s348_s27, %s538_s0  ;;  %p544_p2 = scmp.lt.s32.totalorder %s538_s0, %s538_s0 }
  0x24   :  { %194 = vmatmul.mubr.f32.vlgmr.msra.gmra.mrb[0].mxu0 %v105_v23 }
  0x25   :  { %522 = vmatpush3.bf16.msra.mxu0 %v521_v46  ;;  %453 = vmatprep.mubr.msk.f32.mxu0 %vm564_vm0, %v565_v53  ;;  %p545_p3 = por %p544_p2, %p543_p1 }
  0x26   :  { %264 = vmatmul.mubr.f32.vlgmr.msra.gmra.mrb[0].mxu1 %v112_v32  ;;  %523 = vmatprep.subr.bf16.mxu0 %v563_v47 }
  0x27   :  { %p546_p4 = pnand %p545_p3, %p539_p0 }
  0x29   :  { %525 = vmatpush3.bf16.msra.mxu0 %v524_v50 }
  0x2a   :  { %526 = vmatprep.subr.bf16.mxu0 %v563_v47 }
  0x2d   :  { %528 = vmatpush3.bf16.msra.mxu0 %v527_v54 }
  0x2e   :  { %529 = vmatprep.subr.bf16.mxu0 %v563_v47 }
  0x31   :  { %531 = vmatpush3.bf16.msra.mxu0 %v530_v57 }
  0x34   :  { %454 = vmatmul.mubr.msk.f32.vlgmr.msra.gmra.mrb[2].mxu0 %vm126_vm1, %v356_v58 }
  0xf7   :  { %v390_v59 = vpop.f32.mrb[0].mxu0 }
  0xf8   :  { %v391_v61 = vpop.f32.mrb[1].mxu0 }
  0xf9   :  { %v425_v62 = vpop.f32.mrb[0].mxu1  ;;  %v392_v63 = vadd.f32 %v391_v61, %v390_v59 }
  0xfa   :  { %v426_v0 = vpop.f32.mrb[1].mxu1 }
  0xfb   :  { %v427_v1 = vadd.f32 %v426_v0, %v425_v62  ;;  %v196_v2 = vadd.f32 %v392_v63, %v355_v60 }
  0xfd   :  { %v266_v3 = vadd.f32 %v427_v1, %v196_v2 }
 0x107   :  { %v335_v4 = vpop.f32.mrb[2].mxu0 }
 0x108   :  { %v336_v5 = vadd.f32 %v335_v4, %v266_v3  ;;  %v455_v6 = vpop.f32.mrb[3].mxu0 }
 0x10a   :  { %340 = vst.msk [vmem:[#allocation2] sm:$0x3] %vm339_vm2, %v336_v5 }
 0x10b   :  { %549 = shalt.err (!%p546_p4)
}
 0x10c   :  { %s550_s29 = scalar_lea.hbm %s827_s3, 32 }
 0x10d   :  { %p551_p5 = scmp.ne.s32.totalorder %s827_s3, %s550_s29  ;;  %p554_p6 = scmp.lt.u32.totalorder %s550_s29, %s827_s3 }
 0x10f   :  { %p556_p7 = pnand %p554_p6, %p551_p5 }
 0x111   :  { %559 = shalt.err (!%p556_p7)
}
 0x112   :  { %350 = dma.vmem_to_hbm [thread:$0]  %s348_s27, 32, %s827_s3, [#allocation3]  }
 0x113   :  { %560 = dma.done.wait [#allocation3], 32  }
 0x114   :  { %561 = vsyncadd [#allocation3], 4294967264 }
 0x115   :  { %354 = vsyncpa [#allocation3], 1 }

</bundles_post_ra>
